<compile_context>
chip_gen: v6e
topology: v6e:2x2x1
jax: 0.10.0
libtpu: 0.0.40
codegen_flags: <defaults>
</compile_context>

<pallas_src>
import functools

import jax
import jax.numpy as jnp
from jax.experimental import pallas as pl
from jax.experimental.pallas import tpu as pltpu


# ---------------------------------------------------------------------------
# Single fused kernel: hypergraph operator + encoder + module ReLU + decoder +
# (implicit) flatten + residual classifier stack.
#
# Slab A layout (rows, width WA >= max(N*F, N, E)):
#   [0        , NF       )  kronmask   (NF, NF)
#   [NF       , 2NF      )  R          (NF, N)
#   [2NF      , 2NF+N    )  R^T        (N,  NF)
#   [2NF+N    , 2NF+N+E  )  HW^T       (E,  N)
#   [2NF+N+E  , 2NF+2N+E )  invDE^T    (N,  E)
#   then 4 blocks of NF rows: I_N (x) enc_th1 / enc_th2 / dec_th1 / dec_th2
# Slab B (12 bias rows, width >= max(NF, hc)):
#   enc_b1*, enc_b2*, dec_b1*, dec_b2* (tiled over N), b0, b1a, b1b, b2a, b2b,
#   b3a, b3b, bo   (classifier biases padded to slab width)
# Slab C (width hc): w0 (NF rows), w1a, w1b, w2a, w2b, w3a, w3b, wo (padded).
# Output: (B, 2*NF + n_out) = [ y_h | z | logits ].
# ---------------------------------------------------------------------------
def _sehgnn_kernel(x_ref, a_ref, vec_ref, clsw_ref, out_ref, *, N, E):
    f32 = jnp.float32
    B, NF = x_ref.shape
    HC = clsw_ref.shape[1]
    n_out = out_ref.shape[1] - 2 * NF

    # ---- slab A views (static slices, zero-cost addressing) ----------------
    o = 0
    kronmask = a_ref[o:o + NF, :NF]; o += NF
    r_mat    = a_ref[o:o + NF, :N];  o += NF
    rt_mat   = a_ref[o:o + N,  :NF]; o += N
    hw_t     = a_ref[o:o + E,  :N];  o += E
    inv_t    = a_ref[o:o + N,  :E];  o += N
    eth1 = a_ref[o:o + NF, :NF]; o += NF
    eth2 = a_ref[o:o + NF, :NF]; o += NF
    dth1 = a_ref[o:o + NF, :NF]; o += NF
    dth2 = a_ref[o:o + NF, :NF]; o += NF

    # ---- propagation operator in flattened layout ---------------------------
    # g = HW @ invDE_HT_DV2 ;  g^T = invDE^T @ HW^T ;  M = expand(g^T) (.) kronmask
    g_t = jnp.dot(inv_t, hw_t, preferred_element_type=f32)                 # (N, N)
    m = jnp.dot(jnp.dot(r_mat, g_t, preferred_element_type=f32), rt_mat,
                preferred_element_type=f32) * kronmask                     # (NF, NF)

    # ---- bias rows -----------------------------------------------------------
    eb1 = vec_ref[0:1, :NF]
    eb2 = vec_ref[1:2, :NF]
    db1 = vec_ref[2:3, :NF]
    db2 = vec_ref[3:4, :NF]
    b0  = vec_ref[4:5, :HC]
    b1a = vec_ref[5:6, :HC]
    b1b = vec_ref[6:7, :HC]
    b2a = vec_ref[7:8, :HC]
    b2b = vec_ref[8:9, :HC]
    b3a = vec_ref[9:10, :HC]
    b3b = vec_ref[10:11, :HC]
    bo  = vec_ref[11:12, :HC]

    # ---- one HGNN_weight block (two weighted hypergraph conv layers) --------
    def hgnn_block(v, t1, bb1, t2, bb2):
        h = jnp.dot(v, t1, preferred_element_type=f32) + bb1
        h = jnp.maximum(jnp.dot(h, m, preferred_element_type=f32), 0.0)
        # dropout(p=0.0) -> identity
        h2 = jnp.dot(h, t2, preferred_element_type=f32) + bb2
        return jnp.dot(h2, m, preferred_element_type=f32)

    x2d = x_ref[...]                                                       # (B, N*F)

    # encoder_0 with the module-level self.ReLU(y) fused into its epilogue
    y2d = jnp.maximum(hgnn_block(x2d, eth1, eb1, eth2, eb2), 0.0)
    # decoder_0 (consumes the ReLU'd y, no final ReLU)
    z2d = hgnn_block(y2d, dth1, db1, dth2, db2)

    out_ref[:, 0:NF] = y2d                                                 # y_h
    out_ref[:, NF:2 * NF] = z2d                                            # z

    # ---- residual MLP classifier stack (flatten is already the layout) ------
    w0  = clsw_ref[0:NF, :]
    base = NF
    w1a = clsw_ref[base + 0 * HC:base + 1 * HC, :]
    w1b = clsw_ref[base + 1 * HC:base + 2 * HC, :]
    w2a = clsw_ref[base + 2 * HC:base + 3 * HC, :]
    w2b = clsw_ref[base + 3 * HC:base + 4 * HC, :]
    w3a = clsw_ref[base + 4 * HC:base + 5 * HC, :]
    w3b = clsw_ref[base + 5 * HC:base + 6 * HC, :]
    wo  = clsw_ref[base + 6 * HC:base + 7 * HC, :]   # cols >= n_out are zero-padded

    def lin_relu(v, wt, bt):
        return jnp.maximum(
            jnp.dot(v, wt, preferred_element_type=f32) + bt, 0.0)

    c0 = lin_relu(y2d, w0, b0)                                    # classifier_0
    c1 = lin_relu(lin_relu(c0, w1a, b1a), w1b, b1b)               # classifier_1
    c2 = lin_relu(lin_relu(c1 + c0, w2a, b2a), w2b, b2b)          # classifier_2
    c3 = lin_relu(lin_relu(c2 + c1, w3a, b3a), w3b, b3b)          # classifier_3
    # classifier_out on (c3 + c2 + c0): matches the PyTorch source exactly
    # (y1 is intentionally skipped in the final residual sum).
    res = jnp.dot(c3 + c2 + c0, wo, preferred_element_type=f32) + bo
    out_ref[:, 2 * NF:] = res[:, :n_out]


# ---------------------------------------------------------------------------
# Full seHGNN forward: one pallas_call; parameter packing / tiny reshapes and
# the input-only outputs (HW, W_sparse, w2) are plain JAX outside the kernel.
# ---------------------------------------------------------------------------
def sehgnn_forward(x, dv2_h_invde, invde_ht_dv2, h_inc, params):
    del h_inc  # H is carried through the PyTorch API but unused in this forward math
    f32 = jnp.float32
    B, N, F = x.shape
    E = dv2_h_invde.shape[1]
    NF = N * F
    hc = params["w0"].shape[1]
    n_out = params["wo"].shape[1]
    assert params["w0"].shape[0] == NF, "num_of_hidden must equal N*F"

    # ---- outputs that depend only on inputs/params (kept out of the kernel) --
    w = params["w_edge"].astype(f32)                       # (1, E)
    hw = dv2_h_invde.astype(f32) * w                       # HW   (N, E)
    w_sparse = jnp.diag(w[0])                              # W_sparse (E, E)
    w2 = w.reshape(-1)                                     # (E,)

    # ---- layout plumbing (free XLA reshapes / transposes) --------------------
    x2d = x.reshape(B, NF).astype(f32)
    hw_t = hw.T                                            # (E, N)
    inv_t = invde_ht_dv2.astype(f32).T                     # (N, E)

    # shape-only constant matrices for the Kronecker-expanded propagation
    eye_n = jnp.eye(N, dtype=f32)
    kronmask = jnp.kron(jnp.ones((N, N), f32), jnp.eye(F, dtype=f32))   # (NF, NF)
    r_mat = jnp.kron(eye_n, jnp.ones((F, 1), f32))                      # (NF, N)
    rt_mat = r_mat.T                                                    # (N, NF)
    th_exp = [jnp.kron(eye_n, params[k].astype(f32))                    # (NF, NF)
              for k in ("enc_th1", "enc_th2", "dec_th1", "dec_th2")]

    # ---- slab A: matrices ------------------------------------------------------
    WA = max(NF, N, E)

    def padw(a, width):
        return jnp.pad(a.astype(f32), ((0, 0), (0, width - a.shape[1])))

    slab_a = jnp.concatenate(
        [padw(kronmask, WA), padw(r_mat, WA), padw(rt_mat, WA),
         padw(hw_t, WA), padw(inv_t, WA)]
        + [padw(t, WA) for t in th_exp], axis=0)

    # ---- slab B: bias rows -----------------------------------------------------
    WB = max(NF, hc, n_out)

    def rowv(v):
        v = v.astype(f32).reshape(1, -1)
        return jnp.pad(v, ((0, 0), (0, WB - v.shape[1])))

    slab_b = jnp.concatenate([
        rowv(jnp.tile(params["enc_b1"], (1, N))),
        rowv(jnp.tile(params["enc_b2"], (1, N))),
        rowv(jnp.tile(params["dec_b1"], (1, N))),
        rowv(jnp.tile(params["dec_b2"], (1, N))),
        rowv(params["b0"]), rowv(params["b1a"]), rowv(params["b1b"]),
        rowv(params["b2a"]), rowv(params["b2b"]),
        rowv(params["b3a"]), rowv(params["b3b"]),
        rowv(params["bo"]),
    ], axis=0)

    # ---- slab C: classifier weights --------------------------------------------
    wo_pad = jnp.pad(params["wo"].astype(f32), ((0, 0), (0, hc - n_out)))
    slab_c = jnp.concatenate([
        params["w0"].astype(f32),
        params["w1a"].astype(f32), params["w1b"].astype(f32),
        params["w2a"].astype(f32), params["w2b"].astype(f32),
        params["w3a"].astype(f32), params["w3b"].astype(f32),
        wo_pad,
    ], axis=0)

    vmem = pltpu.MemorySpace.VMEM
    packed = pl.pallas_call(
        functools.partial(_sehgnn_kernel, N=N, E=E),
        out_shape=jax.ShapeDtypeStruct((B, 2 * NF + n_out), f32),
        in_specs=[pl.BlockSpec(memory_space=vmem)] * 4,
        out_specs=pl.BlockSpec(memory_space=vmem),
    )(x2d, slab_a, slab_b, slab_c)

    y_h = packed[:, :NF].reshape(B, N, F)
    z = packed[:, NF:2 * NF].reshape(B, N, F)
    out = packed[:, 2 * NF:]
    return z, out, y_h, hw, w_sparse, w2


# ---------------------------------------------------------------------------
# Plain-JAX (XLA) reference of the same math, for a parity check.
# ---------------------------------------------------------------------------
def _reference_forward(x, dv2, inv, params):
    w = params["w_edge"]                         # (1, E)
    hw = dv2 * w
    g = hw @ inv
    w_sparse = jnp.diag(w[0])

    def block(v, th1, b1, th2, b2):
        h = jnp.einsum("bnf,fk->bnk", v, th1) + b1
        h = jax.nn.relu(jnp.einsum("mn,bnk->bmk", g, h))
        h2 = jnp.einsum("bnf,fk->bnk", h, th2) + b2
        return jnp.einsum("mn,bnk->bmk", g, h2)

    y = jax.nn.relu(block(x, params["enc_th1"], params["enc_b1"],
                          params["enc_th2"], params["enc_b2"]))
    z = block(y, params["dec_th1"], params["dec_b1"],
              params["dec_th2"], params["dec_b2"])
    yf = y.reshape(y.shape[0], -1)
    lr = lambda v, wt, bt: jax.nn.relu(v @ wt + bt)
    y0 = lr(yf, params["w0"], params["b0"])
    y1 = lr(lr(y0, params["w1a"], params["b1a"]), params["w1b"], params["b1b"])
    y2 = lr(lr(y1 + y0, params["w2a"], params["b2a"]), params["w2b"], params["b2b"])
    y3 = lr(lr(y2 + y1, params["w3a"], params["b3a"]), params["w3b"], params["b3b"])
    out = (y3 + y2 + y0) @ params["wo"] + params["bo"]
    return z, out, y, hw, w_sparse


# ---------------------------------------------------------------------------
# Deterministic parameter init + small example run
# ---------------------------------------------------------------------------
def make_params(key, feat, num_edges, num_hidden, num_hidden_classify):
    ks = jax.random.split(key, 20)
    f = lambda k, s: (0.1 * jax.random.normal(k, s)).astype(jnp.float32)
    hc = num_hidden_classify
    return {
        # learnable hyperedge weights (the diag of self.W), kept as (1, E)
        "w_edge": (0.5 + 0.5 * jax.random.uniform(ks[0], (1, num_edges))).astype(jnp.float32),
        # encoder_0 (HGNN_weight: in_ch=3, n_hid=3, n_class=3)
        "enc_th1": f(ks[1], (feat, feat)), "enc_b1": f(ks[2], (1, feat)),
        "enc_th2": f(ks[3], (feat, feat)), "enc_b2": f(ks[4], (1, feat)),
        # decoder_0
        "dec_th1": f(ks[5], (feat, feat)), "dec_b1": f(ks[6], (1, feat)),
        "dec_th2": f(ks[7], (feat, feat)), "dec_b2": f(ks[8], (1, feat)),
        # classifier_0
        "w0": f(ks[9], (num_hidden, hc)), "b0": f(ks[10], (1, hc)),
        # classifier_1
        "w1a": f(ks[11], (hc, hc)), "b1a": f(ks[12], (1, hc)),
        "w1b": f(ks[13], (hc, hc)), "b1b": f(ks[14], (1, hc)),
        # classifier_2
        "w2a": f(ks[15], (hc, hc)), "b2a": f(ks[16], (1, hc)),
        "w2b": f(ks[17], (hc, hc)), "b2b": f(ks[18], (1, hc)),
        # classifier_3
        "w3a": f(jax.random.fold_in(key, 101), (hc, hc)),
        "b3a": f(jax.random.fold_in(key, 102), (1, hc)),
        "w3b": f(jax.random.fold_in(key, 103), (hc, hc)),
        "b3b": f(jax.random.fold_in(key, 104), (1, hc)),
        # classifier_out
        "wo": f(jax.random.fold_in(key, 105), (hc, 2)),
        "bo": f(jax.random.fold_in(key, 106), (1, 2)),
    }


if __name__ == "__main__":
    B, N, E, F = 2, 16, 8, 3            # batch, nodes, hyperedges, node features
    num_hidden = N * F                  # flattened encoder output -> 48
    num_hidden_classify = 32

    key = jax.random.PRNGKey(0)
    kx, kh, kd1, kd2, kp = jax.random.split(key, 5)

    x = jax.random.normal(kx, (B, N, F), dtype=jnp.float32)
    h_inc = (jax.random.uniform(kh, (N, E)) > 0.5).astype(jnp.float32)       # H
    dv2_h_invde = jax.random.normal(kd1, (N, E), dtype=jnp.float32) * 0.3    # DV2_H_invDE
    invde_ht_dv2 = jax.random.normal(kd2, (E, N), dtype=jnp.float32) * 0.3   # invDE_HT_DV2

    params = make_params(kp, F, E, num_hidden, num_hidden_classify)

    fwd = jax.jit(sehgnn_forward)
    z, out, y_h, hw_h, w_sparse, w2 = fwd(x, dv2_h_invde, invde_ht_dv2, h_inc, params)
    for t in (z, out, y_h, hw_h, w_sparse, w2):
        jax.block_until_ready(t)

    assert z.shape == (B, N, F)
    assert out.shape == (B, 2)
    assert y_h.shape == (B, N, F)
    assert hw_h.shape == (N, E)
    assert w_sparse.shape == (E, E)
    assert w2.shape == (E,)

    # Parity vs a plain jax.jit / XLA forward of the same math (lenient
    # tolerance to allow for MXU f32 matmul pass / association differences).
    z_r, out_r, y_r, hw_r, wsp_r = _reference_forward(x, dv2_h_invde, invde_ht_dv2, params)
    for got, want in ((z, z_r), (out, out_r), (y_h, y_r), (hw_h, hw_r), (w_sparse, wsp_r)):
        assert bool(jnp.allclose(got, want, rtol=5e-2, atol=5e-3)), "mismatch vs reference"

    print("KERNEL_OK")
</pallas_src>

<mosaic_0001>
module attributes {stable_mosaic.version = 11 : i64} {
  func.func @_sehgnn_kernel(%arg0: memref<2x48xf32, #tpu.memory_space<vmem>>, %arg1: memref<328x48xf32, #tpu.memory_space<vmem>>, %arg2: memref<12x48xf32, #tpu.memory_space<vmem>>, %arg3: memref<272x32xf32, #tpu.memory_space<vmem>>, %arg4: memref<2x98xf32, #tpu.memory_space<vmem>>) attributes {dimension_semantics = [], scalar_prefetch = 0 : i64, scratch_operands = 0 : i64, tpu.core_type = #tpu.core_type<tc>} {
    %c0 = arith.constant 0 : index
    %c0_0 = arith.constant 0 : index
    %0 = vector.load %arg1[%c0, %c0_0] : memref<328x48xf32, #tpu.memory_space<vmem>>, vector<48x48xf32>
    %c48 = arith.constant 48 : index
    %c0_1 = arith.constant 0 : index
    %1 = vector.load %arg1[%c48, %c0_1] : memref<328x48xf32, #tpu.memory_space<vmem>>, vector<48x16xf32>
    %c96 = arith.constant 96 : index
    %c0_2 = arith.constant 0 : index
    %2 = vector.load %arg1[%c96, %c0_2] : memref<328x48xf32, #tpu.memory_space<vmem>>, vector<16x48xf32>
    %c112 = arith.constant 112 : index
    %c0_3 = arith.constant 0 : index
    %3 = vector.load %arg1[%c112, %c0_3] : memref<328x48xf32, #tpu.memory_space<vmem>>, vector<8x16xf32>
    %c120 = arith.constant 120 : index
    %c0_4 = arith.constant 0 : index
    %4 = vector.load %arg1[%c120, %c0_4] : memref<328x48xf32, #tpu.memory_space<vmem>>, vector<16x8xf32>
    %c136 = arith.constant 136 : index
    %c0_5 = arith.constant 0 : index
    %5 = vector.load %arg1[%c136, %c0_5] : memref<328x48xf32, #tpu.memory_space<vmem>>, vector<48x48xf32>
    %c184 = arith.constant 184 : index
    %c0_6 = arith.constant 0 : index
    %6 = vector.load %arg1[%c184, %c0_6] : memref<328x48xf32, #tpu.memory_space<vmem>>, vector<48x48xf32>
    %c232 = arith.constant 232 : index
    %c0_7 = arith.constant 0 : index
    %7 = vector.load %arg1[%c232, %c0_7] : memref<328x48xf32, #tpu.memory_space<vmem>>, vector<48x48xf32>
    %c280 = arith.constant 280 : index
    %c0_8 = arith.constant 0 : index
    %8 = vector.load %arg1[%c280, %c0_8] : memref<328x48xf32, #tpu.memory_space<vmem>>, vector<48x48xf32>
    %cst = arith.constant dense<0.000000e+00> : vector<16x16xf32>
    %9 = tpu.matmul %4, %3, %cst {dimension_numbers = #tpu.dot_dimension_numbers<[1], [0], [0], [1], [0, 0, 1, 1], [], []>} : vector<16x8xf32>, vector<8x16xf32>, vector<16x16xf32> -> vector<16x16xf32>
    %cst_9 = arith.constant dense<0.000000e+00> : vector<48x16xf32>
    %10 = tpu.matmul %1, %9, %cst_9 {dimension_numbers = #tpu.dot_dimension_numbers<[1], [0], [0], [1], [0, 0, 1, 1], [], []>} : vector<48x16xf32>, vector<16x16xf32>, vector<48x16xf32> -> vector<48x16xf32>
    %cst_10 = arith.constant dense<0.000000e+00> : vector<48x48xf32>
    %11 = tpu.matmul %10, %2, %cst_10 {dimension_numbers = #tpu.dot_dimension_numbers<[1], [0], [0], [1], [0, 0, 1, 1], [], []>} : vector<48x16xf32>, vector<16x48xf32>, vector<48x48xf32> -> vector<48x48xf32>
    %12 = arith.mulf %11, %0 : vector<48x48xf32>
    %c0_11 = arith.constant 0 : index
    %c0_12 = arith.constant 0 : index
    %13 = vector.load %arg2[%c0_11, %c0_12] : memref<12x48xf32, #tpu.memory_space<vmem>>, vector<1x48xf32>
    %c1 = arith.constant 1 : index
    %c0_13 = arith.constant 0 : index
    %14 = vector.load %arg2[%c1, %c0_13] : memref<12x48xf32, #tpu.memory_space<vmem>>, vector<1x48xf32>
    %c2 = arith.constant 2 : index
    %c0_14 = arith.constant 0 : index
    %15 = vector.load %arg2[%c2, %c0_14] : memref<12x48xf32, #tpu.memory_space<vmem>>, vector<1x48xf32>
    %c3 = arith.constant 3 : index
    %c0_15 = arith.constant 0 : index
    %16 = vector.load %arg2[%c3, %c0_15] : memref<12x48xf32, #tpu.memory_space<vmem>>, vector<1x48xf32>
    %c4 = arith.constant 4 : index
    %c0_16 = arith.constant 0 : index
    %17 = vector.load %arg2[%c4, %c0_16] : memref<12x48xf32, #tpu.memory_space<vmem>>, vector<1x32xf32>
    %c5 = arith.constant 5 : index
    %c0_17 = arith.constant 0 : index
    %18 = vector.load %arg2[%c5, %c0_17] : memref<12x48xf32, #tpu.memory_space<vmem>>, vector<1x32xf32>
    %c6 = arith.constant 6 : index
    %c0_18 = arith.constant 0 : index
    %19 = vector.load %arg2[%c6, %c0_18] : memref<12x48xf32, #tpu.memory_space<vmem>>, vector<1x32xf32>
    %c7 = arith.constant 7 : index
    %c0_19 = arith.constant 0 : index
    %20 = vector.load %arg2[%c7, %c0_19] : memref<12x48xf32, #tpu.memory_space<vmem>>, vector<1x32xf32>
    %c8 = arith.constant 8 : index
    %c0_20 = arith.constant 0 : index
    %21 = vector.load %arg2[%c8, %c0_20] : memref<12x48xf32, #tpu.memory_space<vmem>>, vector<1x32xf32>
    %c9 = arith.constant 9 : index
    %c0_21 = arith.constant 0 : index
    %22 = vector.load %arg2[%c9, %c0_21] : memref<12x48xf32, #tpu.memory_space<vmem>>, vector<1x32xf32>
    %c10 = arith.constant 10 : index
    %c0_22 = arith.constant 0 : index
    %23 = vector.load %arg2[%c10, %c0_22] : memref<12x48xf32, #tpu.memory_space<vmem>>, vector<1x32xf32>
    %c11 = arith.constant 11 : index
    %c0_23 = arith.constant 0 : index
    %24 = vector.load %arg2[%c11, %c0_23] : memref<12x48xf32, #tpu.memory_space<vmem>>, vector<1x32xf32>
    %c0_24 = arith.constant 0 : index
    %c0_25 = arith.constant 0 : index
    %25 = vector.load %arg0[%c0_24, %c0_25] : memref<2x48xf32, #tpu.memory_space<vmem>>, vector<2x48xf32>
    %cst_26 = arith.constant dense<0.000000e+00> : vector<2x48xf32>
    %26 = tpu.matmul %25, %5, %cst_26 {dimension_numbers = #tpu.dot_dimension_numbers<[1], [0], [0], [1], [0, 0, 1, 1], [], []>} : vector<2x48xf32>, vector<48x48xf32>, vector<2x48xf32> -> vector<2x48xf32>
    %27 = vector.broadcast %13 : vector<1x48xf32> to vector<2x48xf32>
    %28 = arith.addf %26, %27 : vector<2x48xf32>
    %cst_27 = arith.constant dense<0.000000e+00> : vector<2x48xf32>
    %29 = tpu.matmul %28, %12, %cst_27 {dimension_numbers = #tpu.dot_dimension_numbers<[1], [0], [0], [1], [0, 0, 1, 1], [], []>} : vector<2x48xf32>, vector<48x48xf32>, vector<2x48xf32> -> vector<2x48xf32>
    %cst_28 = arith.constant 0.000000e+00 : f32
    %30 = vector.broadcast %cst_28 : f32 to vector<2x48xf32>
    %31 = arith.maximumf %29, %30 : vector<2x48xf32>
    %cst_29 = arith.constant dense<0.000000e+00> : vector<2x48xf32>
    %32 = tpu.matmul %31, %6, %cst_29 {dimension_numbers = #tpu.dot_dimension_numbers<[1], [0], [0], [1], [0, 0, 1, 1], [], []>} : vector<2x48xf32>, vector<48x48xf32>, vector<2x48xf32> -> vector<2x48xf32>
    %33 = vector.broadcast %14 : vector<1x48xf32> to vector<2x48xf32>
    %34 = arith.addf %32, %33 : vector<2x48xf32>
    %cst_30 = arith.constant dense<0.000000e+00> : vector<2x48xf32>
    %35 = tpu.matmul %34, %12, %cst_30 {dimension_numbers = #tpu.dot_dimension_numbers<[1], [0], [0], [1], [0, 0, 1, 1], [], []>} : vector<2x48xf32>, vector<48x48xf32>, vector<2x48xf32> -> vector<2x48xf32>
    %cst_31 = arith.constant 0.000000e+00 : f32
    %36 = vector.broadcast %cst_31 : f32 to vector<2x48xf32>
    %37 = arith.maximumf %35, %36 : vector<2x48xf32>
    %cst_32 = arith.constant dense<0.000000e+00> : vector<2x48xf32>
    %38 = tpu.matmul %37, %7, %cst_32 {dimension_numbers = #tpu.dot_dimension_numbers<[1], [0], [0], [1], [0, 0, 1, 1], [], []>} : vector<2x48xf32>, vector<48x48xf32>, vector<2x48xf32> -> vector<2x48xf32>
    %39 = vector.broadcast %15 : vector<1x48xf32> to vector<2x48xf32>
    %40 = arith.addf %38, %39 : vector<2x48xf32>
    %cst_33 = arith.constant dense<0.000000e+00> : vector<2x48xf32>
    %41 = tpu.matmul %40, %12, %cst_33 {dimension_numbers = #tpu.dot_dimension_numbers<[1], [0], [0], [1], [0, 0, 1, 1], [], []>} : vector<2x48xf32>, vector<48x48xf32>, vector<2x48xf32> -> vector<2x48xf32>
    %cst_34 = arith.constant 0.000000e+00 : f32
    %42 = vector.broadcast %cst_34 : f32 to vector<2x48xf32>
    %43 = arith.maximumf %41, %42 : vector<2x48xf32>
    %cst_35 = arith.constant dense<0.000000e+00> : vector<2x48xf32>
    %44 = tpu.matmul %43, %8, %cst_35 {dimension_numbers = #tpu.dot_dimension_numbers<[1], [0], [0], [1], [0, 0, 1, 1], [], []>} : vector<2x48xf32>, vector<48x48xf32>, vector<2x48xf32> -> vector<2x48xf32>
    %45 = vector.broadcast %16 : vector<1x48xf32> to vector<2x48xf32>
    %46 = arith.addf %44, %45 : vector<2x48xf32>
    %cst_36 = arith.constant dense<0.000000e+00> : vector<2x48xf32>
    %47 = tpu.matmul %46, %12, %cst_36 {dimension_numbers = #tpu.dot_dimension_numbers<[1], [0], [0], [1], [0, 0, 1, 1], [], []>} : vector<2x48xf32>, vector<48x48xf32>, vector<2x48xf32> -> vector<2x48xf32>
    %c0_37 = arith.constant 0 : index
    %c0_38 = arith.constant 0 : index
    %48 = vector.load %arg4[%c0_37, %c0_38] : memref<2x98xf32, #tpu.memory_space<vmem>>, vector<2x48xf32>
    tpu.vector_store %arg4[%c0_37, %c0_38], %37 {strides = array<i32>} : memref<2x98xf32, #tpu.memory_space<vmem>>, vector<2x48xf32>,
    %c0_39 = arith.constant 0 : index
    %c48_40 = arith.constant 48 : index
    %49 = vector.load %arg4[%c0_39, %c48_40] : memref<2x98xf32, #tpu.memory_space<vmem>>, vector<2x48xf32>
    tpu.vector_store %arg4[%c0_39, %c48_40], %47 {strides = array<i32>} : memref<2x98xf32, #tpu.memory_space<vmem>>, vector<2x48xf32>,
    %c0_41 = arith.constant 0 : index
    %c0_42 = arith.constant 0 : index
    %50 = vector.load %arg3[%c0_41, %c0_42] : memref<272x32xf32, #tpu.memory_space<vmem>>, vector<48x32xf32>
    %c48_43 = arith.constant 48 : index
    %c0_44 = arith.constant 0 : index
    %51 = vector.load %arg3[%c48_43, %c0_44] : memref<272x32xf32, #tpu.memory_space<vmem>>, vector<32x32xf32>
    %c80 = arith.constant 80 : index
    %c0_45 = arith.constant 0 : index
    %52 = vector.load %arg3[%c80, %c0_45] : memref<272x32xf32, #tpu.memory_space<vmem>>, vector<32x32xf32>
    %c112_46 = arith.constant 112 : index
    %c0_47 = arith.constant 0 : index
    %53 = vector.load %arg3[%c112_46, %c0_47] : memref<272x32xf32, #tpu.memory_space<vmem>>, vector<32x32xf32>
    %c144 = arith.constant 144 : index
    %c0_48 = arith.constant 0 : index
    %54 = vector.load %arg3[%c144, %c0_48] : memref<272x32xf32, #tpu.memory_space<vmem>>, vector<32x32xf32>
    %c176 = arith.constant 176 : index
    %c0_49 = arith.constant 0 : index
    %55 = vector.load %arg3[%c176, %c0_49] : memref<272x32xf32, #tpu.memory_space<vmem>>, vector<32x32xf32>
    %c208 = arith.constant 208 : index
    %c0_50 = arith.constant 0 : index
    %56 = vector.load %arg3[%c208, %c0_50] : memref<272x32xf32, #tpu.memory_space<vmem>>, vector<32x32xf32>
    %c240 = arith.constant 240 : index
    %c0_51 = arith.constant 0 : index
    %57 = vector.load %arg3[%c240, %c0_51] : memref<272x32xf32, #tpu.memory_space<vmem>>, vector<32x32xf32>
    %cst_52 = arith.constant dense<0.000000e+00> : vector<2x32xf32>
    %58 = tpu.matmul %37, %50, %cst_52 {dimension_numbers = #tpu.dot_dimension_numbers<[1], [0], [0], [1], [0, 0, 1, 1], [], []>} : vector<2x48xf32>, vector<48x32xf32>, vector<2x32xf32> -> vector<2x32xf32>
    %59 = vector.broadcast %17 : vector<1x32xf32> to vector<2x32xf32>
    %60 = arith.addf %58, %59 : vector<2x32xf32>
    %cst_53 = arith.constant 0.000000e+00 : f32
    %61 = vector.broadcast %cst_53 : f32 to vector<2x32xf32>
    %62 = arith.maximumf %60, %61 : vector<2x32xf32>
    %cst_54 = arith.constant dense<0.000000e+00> : vector<2x32xf32>
    %63 = tpu.matmul %62, %51, %cst_54 {dimension_numbers = #tpu.dot_dimension_numbers<[1], [0], [0], [1], [0, 0, 1, 1], [], []>} : vector<2x32xf32>, vector<32x32xf32>, vector<2x32xf32> -> vector<2x32xf32>
    %64 = vector.broadcast %18 : vector<1x32xf32> to vector<2x32xf32>
    %65 = arith.addf %63, %64 : vector<2x32xf32>
    %cst_55 = arith.constant 0.000000e+00 : f32
    %66 = vector.broadcast %cst_55 : f32 to vector<2x32xf32>
    %67 = arith.maximumf %65, %66 : vector<2x32xf32>
    %cst_56 = arith.constant dense<0.000000e+00> : vector<2x32xf32>
    %68 = tpu.matmul %67, %52, %cst_56 {dimension_numbers = #tpu.dot_dimension_numbers<[1], [0], [0], [1], [0, 0, 1, 1], [], []>} : vector<2x32xf32>, vector<32x32xf32>, vector<2x32xf32> -> vector<2x32xf32>
    %69 = vector.broadcast %19 : vector<1x32xf32> to vector<2x32xf32>
    %70 = arith.addf %68, %69 : vector<2x32xf32>
    %cst_57 = arith.constant 0.000000e+00 : f32
    %71 = vector.broadcast %cst_57 : f32 to vector<2x32xf32>
    %72 = arith.maximumf %70, %71 : vector<2x32xf32>
    %73 = arith.addf %72, %62 : vector<2x32xf32>
    %cst_58 = arith.constant dense<0.000000e+00> : vector<2x32xf32>
    %74 = tpu.matmul %73, %53, %cst_58 {dimension_numbers = #tpu.dot_dimension_numbers<[1], [0], [0], [1], [0, 0, 1, 1], [], []>} : vector<2x32xf32>, vector<32x32xf32>, vector<2x32xf32> -> vector<2x32xf32>
    %75 = vector.broadcast %20 : vector<1x32xf32> to vector<2x32xf32>
    %76 = arith.addf %74, %75 : vector<2x32xf32>
    %cst_59 = arith.constant 0.000000e+00 : f32
    %77 = vector.broadcast %cst_59 : f32 to vector<2x32xf32>
    %78 = arith.maximumf %76, %77 : vector<2x32xf32>
    %cst_60 = arith.constant dense<0.000000e+00> : vector<2x32xf32>
    %79 = tpu.matmul %78, %54, %cst_60 {dimension_numbers = #tpu.dot_dimension_numbers<[1], [0], [0], [1], [0, 0, 1, 1], [], []>} : vector<2x32xf32>, vector<32x32xf32>, vector<2x32xf32> -> vector<2x32xf32>
    %80 = vector.broadcast %21 : vector<1x32xf32> to vector<2x32xf32>
    %81 = arith.addf %79, %80 : vector<2x32xf32>
    %cst_61 = arith.constant 0.000000e+00 : f32
    %82 = vector.broadcast %cst_61 : f32 to vector<2x32xf32>
    %83 = arith.maximumf %81, %82 : vector<2x32xf32>
    %84 = arith.addf %83, %72 : vector<2x32xf32>
    %cst_62 = arith.constant dense<0.000000e+00> : vector<2x32xf32>
    %85 = tpu.matmul %84, %55, %cst_62 {dimension_numbers = #tpu.dot_dimension_numbers<[1], [0], [0], [1], [0, 0, 1, 1], [], []>} : vector<2x32xf32>, vector<32x32xf32>, vector<2x32xf32> -> vector<2x32xf32>
    %86 = vector.broadcast %22 : vector<1x32xf32> to vector<2x32xf32>
    %87 = arith.addf %85, %86 : vector<2x32xf32>
    %cst_63 = arith.constant 0.000000e+00 : f32
    %88 = vector.broadcast %cst_63 : f32 to vector<2x32xf32>
    %89 = arith.maximumf %87, %88 : vector<2x32xf32>
    %cst_64 = arith.constant dense<0.000000e+00> : vector<2x32xf32>
    %90 = tpu.matmul %89, %56, %cst_64 {dimension_numbers = #tpu.dot_dimension_numbers<[1], [0], [0], [1], [0, 0, 1, 1], [], []>} : vector<2x32xf32>, vector<32x32xf32>, vector<2x32xf32> -> vector<2x32xf32>
    %91 = vector.broadcast %23 : vector<1x32xf32> to vector<2x32xf32>
    %92 = arith.addf %90, %91 : vector<2x32xf32>
    %cst_65 = arith.constant 0.000000e+00 : f32
    %93 = vector.broadcast %cst_65 : f32 to vector<2x32xf32>
    %94 = arith.maximumf %92, %93 : vector<2x32xf32>
    %95 = arith.addf %94, %83 : vector<2x32xf32>
    %96 = arith.addf %95, %62 : vector<2x32xf32>
    %cst_66 = arith.constant dense<0.000000e+00> : vector<2x32xf32>
    %97 = tpu.matmul %96, %57, %cst_66 {dimension_numbers = #tpu.dot_dimension_numbers<[1], [0], [0], [1], [0, 0, 1, 1], [], []>} : vector<2x32xf32>, vector<32x32xf32>, vector<2x32xf32> -> vector<2x32xf32>
    %98 = vector.broadcast %24 : vector<1x32xf32> to vector<2x32xf32>
    %99 = arith.addf %97, %98 : vector<2x32xf32>
    %100 = vector.extract_strided_slice %99 {offsets = [0, 0], sizes = [2, 2], strides = [1, 1]} : vector<2x32xf32> to vector<2x2xf32>
    %c0_67 = arith.constant 0 : index
    %c96_68 = arith.constant 96 : index
    %101 = vector.load %arg4[%c0_67, %c96_68] : memref<2x98xf32, #tpu.memory_space<vmem>>, vector<2x2xf32>
    tpu.vector_store %arg4[%c0_67, %c96_68], %100 {strides = array<i32>} : memref<2x98xf32, #tpu.memory_space<vmem>>, vector<2x2xf32>,
    return
  }
}

</mosaic_0001>

<bundles_post_ra>
// kernel: sehgnn_forward.1
= control target key start
LH: loop header
LB: loop body
LE: loop exit
PB: predicated region body
PF: predicated region fallthrough
CT: control target
= control target key end

     0   :  { %vm58_vm0 = vcmask 64512   ;;  %vm140_vm1 = vcmask 130048   ;;  %v2073_v13 = vmov 0.0   ;;  %vm2074_vm2 = vmmov 0   ;;  %s2563_s1 = inlined_call_operand.vmem [shape: f32[328,48], index: 1, kind: input, shape index: {}]   ;;  %s2564_s0 = inlined_call_operand.vmem [shape: f32[2,48], index: 0, kind: input, shape index: {}]   ;;  %s2565_s2 = inlined_call_operand.vmem [shape: f32[12,48], index: 2, kind: input, shape index: {}]   ;;  %s2566_s4 = inlined_call_operand.vmem [shape: f32[2,98], index: 4, kind: output, shape index: {}]   ;;  %s2567_s3 = inlined_call_operand.vmem [shape: f32[272,32], index: 3, kind: input, shape index: {}]  }
   0x1   :  { %v31_v0 = vld [vmem:[%s2563_s1 + $0x70] sm:$0xff]  ;;  %v32_v1 = vld [vmem:[%s2563_s1 + $0x78] sm:$0xff]  ;;  %v33_v2 = vld [vmem:[%s2563_s1 + $0x80] sm:$0xff]  ;;  %vm390_vm3 = vcmask 392192   ;;  %vm990_vm4 = vcmask 386048   ;;  %vm1111_vm5 = vcmask 261120  }
   0x2   :  { %1826 = vmatprep.subr.mxu0 %v31_v0  ;;  %1828 = vmatprep.mubr.msk.f32.mxu0 %vm58_vm0, %v32_v1  ;;  %v23_v3 = vld [vmem:[%s2563_s1 + $0x30] sm:$0xff]  ;;  %v24_v6 = vld [vmem:[%s2563_s1 + $0x38] sm:$0xff]  ;;  %v25_v7 = vld [vmem:[%s2563_s1 + $0x40] sm:$0xff]  ;;  %vm996_vm6 = vcmask 779648   ;;  %vm1661_vm7 = vcmask 796416  }
   0x3   :  { %1827 = vmatpush3.msra.mxu0 %v31_v0  ;;  %1835 = vmatprep.mubr.msk.f32.mxu1 %vm140_vm1, %v23_v3  ;;  %v26_v8 = vld [vmem:[%s2563_s1 + $0x48] sm:$0xff]  ;;  %v27_v9 = vld [vmem:[%s2563_s1 + $0x50] sm:$0xff]  ;;  %v28_v10 = vld [vmem:[%s2563_s1 + $0x58] sm:$0xff] }
   0x4   :  { %1829 = vmatmul.mubr.msk.f32.vlgmr.msra.gmra.mxu0 %vm58_vm0, %v33_v2  ;;  %v30_v11 = vld [vmem:[%s2563_s1 + $0x68] sm:$0xff]  ;;  %v29_v12 = vld [vmem:[%s2563_s1 + $0x60] sm:$0xff]  ;;  %v39_v14 = vld [vmem:[%s2563_s1 + $0xb0] sm:$0xff] }
   0x5   :  { %1844 = vmatprep.subr.mxu0 %v30_v11  ;;  %v38_v15 = vld [vmem:[%s2563_s1 + $0xa8] sm:$0xff]  ;;  %v37_v16 = vld [vmem:[%s2563_s1 + $0xa0] sm:$0xff]  ;;  %v36_v17 = vld [vmem:[%s2563_s1 + $0x98] sm:$0xff] }
   0x6   :  { %1845 = vmatpush3.msra.mxu0 %v30_v11  ;;  %v35_v18 = vld [vmem:[%s2563_s1 + $0x90] sm:$0xff]  ;;  %v34_v19 = vld [vmem:[%s2563_s1 + $0x88] sm:$0xff]  ;;  %v385_v20 = vld [vmem:[%s2564_s0] sm:$0x3] }
   0x7   :  { %1846 = vmatprep.subr.mxu0 %v29_v12  ;;  %v45_v29 = vld [vmem:[%s2563_s1 + $0xe0] sm:$0xff]  ;;  %v44_v30 = vld [vmem:[%s2563_s1 + $0xd8] sm:$0xff]  ;;  %v43_v31 = vld [vmem:[%s2563_s1 + $0xd0] sm:$0xff] }
   0x8   :  { %1847 = vmatpush3.msra.mxu0 %v29_v12  ;;  %v42_v32 = vld [vmem:[%s2563_s1 + $0xc8] sm:$0xff]  ;;  %v21_v39 = vld [vmem:[%s2563_s1 + $0x20] sm:$0xff]  ;;  %v20_v41 = vld [vmem:[%s2563_s1 + $0x18] sm:$0xff] }
   0x9   :  { %1872 = vmatprep.subr.mxu0 %v2073_v13  ;;  %v22_v37 = vld [vmem:[%s2563_s1 + $0x28] sm:$0xff]  ;;  %v19_v44 = vld [vmem:[%s2563_s1 + $0x10] sm:$0xff]  ;;  %v1681_v48 = vld [vmem:[%s2565_s2] ss:$0 sm:$0xff] }
   0xa   :  { %v18_v46 = vld [vmem:[%s2563_s1 + $0x8] sm:$0xff]  ;;  %v17_v49 = vld [vmem:[%s2563_s1] sm:$0xff]  ;;  %v40_v54 = vld [vmem:[%s2563_s1 + $0xb8] sm:$0xff] }
   0xb   :  { %v41_v53 = vld [vmem:[%s2563_s1 + $0xc0] sm:$0xff]  ;;  %v51_v58 = vld [vmem:[%s2563_s1 + $0x110] sm:$0xff]  ;;  %v50_v59 = vld [vmem:[%s2563_s1 + $0x108] sm:$0xff] }
   0xc   :  { %v49_v60 = vld [vmem:[%s2563_s1 + $0x100] sm:$0xff]  ;;  %v48_v61 = vld [vmem:[%s2563_s1 + $0xf8] sm:$0xff]  ;;  %v47_v2 = vld [vmem:[%s2563_s1 + $0xf0] sm:$0xff] }
   0xd   :  { %v1684_v62 = vld [vmem:[%s2565_s2 + $0x1] ss:$0 sm:$0xff]  ;;  %v46_v3 = vld [vmem:[%s2563_s1 + $0xe8] sm:$0xff]  ;;  %v1687_v12 = vld [vmem:[%s2565_s2 + $0x2] ss:$0 sm:$0xff] }
   0xe   :  { %v53_v11 = vld [vmem:[%s2563_s1 + $0x120] sm:$0xff] }
  0xc4   :  { %v1830_v4 = vpop.f32.mrf.mxu0 }
  0xc5   :  { %1831 = vmatprep.subr.mxu1 %v1830_v4 }
  0xc6   :  { %v131_v5 = vpop.f32.mrf.mxu0  ;;  %1832 = vmatpush3.msra.mxu1 %v1830_v4 }
  0xc7   :  { %1833 = vmatprep.subr.mxu1 %v131_v5 }
  0xc8   :  { %1834 = vmatpush3.msra.mxu1 %v131_v5 }
  0xc9   :  { %1836 = vmatmul.mubr.msk.f32.vlgmr.msra.gmra.mxu1 %vm140_vm1, %v24_v6  ;;  %1857 = vmatprep.subr.mxu1 %v2073_v13 }
  0xca   :  { %1838 = vmatprep.mubr.msk.f32.mxu1 %vm140_vm1, %v25_v7  ;;  %1858 = vmatpush3.msra.mxu1 %v39_v14  ;;  %v57_v7 = vld [vmem:[%s2563_s1 + $0x140] sm:$0xff] }
  0xcb   :  { %1859 = vmatprep.subr.mxu1 %v2073_v13 }
  0xcc   :  { %1860 = vmatpush3.msra.mxu1 %v38_v15 }
  0xcd   :  { %1839 = vmatmul.mubr.msk.f32.gmra.mxu1 %vm140_vm1, %v26_v8  ;;  %1861 = vmatprep.subr.mxu1 %v2073_v13  ;;  %v56_v8 = vld [vmem:[%s2563_s1 + $0x138] sm:$0xff] }
  0xce   :  { %1841 = vmatprep.mubr.msk.f32.mxu1 %vm140_vm1, %v27_v9  ;;  %1862 = vmatpush3.msra.mxu1 %v37_v16  ;;  %v55_v9 = vld [vmem:[%s2563_s1 + $0x130] sm:$0xff] }
  0xcf   :  { %1863 = vmatprep.subr.mxu1 %v2073_v13 }
  0xd0   :  { %1864 = vmatpush3.msra.mxu1 %v36_v17  ;;  %v52_v17 = vld [vmem:[%s2563_s1 + $0x118] sm:$0xff] }
  0xd1   :  { %1842 = vmatmul.mubr.msk.f32.gmra.mxu1 %vm140_vm1, %v28_v10  ;;  %1865 = vmatprep.subr.mxu1 %v2073_v13  ;;  %v54_v10 = vld [vmem:[%s2563_s1 + $0x128] sm:$0xff]  ;;  %s2075_s1 = smov 48  }
  0xd2   :  { %1869 = vmatprep.mubr.msk.f32.mxu1 %vm2074_vm2, %v2073_v13  ;;  %1866 = vmatpush3.msra.mxu1 %v35_v18 }
  0xd3   :  { %1867 = vmatprep.subr.mxu1 %v2073_v13 }
  0xd4   :  { %1868 = vmatpush3.msra.mxu1 %v34_v19 }
  0xd5   :  { %1870 = vmatmul.mubr.msk.f32.vlgmr.msra.gmra.mxu1 %vm390_vm3, %v385_v20  ;;  %1887 = vmatprep.subr.mxu1 %v2073_v13  ;;  %v1003_v20 = vld [vmem:[%s2567_s3 + $0x28] sm:$0xff] }
  0xd6   :  { %1899 = vmatprep.mubr.msk.f32.mxu1 %vm2074_vm2, %v2073_v13  ;;  %1888 = vmatpush3.msra.mxu1 %v45_v29 }
  0xd7   :  { %1889 = vmatprep.subr.mxu1 %v2073_v13 }
  0xd8   :  { %1890 = vmatpush3.msra.mxu1 %v44_v30  ;;  %v1007_v30 = vld [vmem:[%s2567_s3 + $0x48] sm:$0xff] }
  0xd9   :  { %1891 = vmatprep.subr.mxu1 %v2073_v13 }
  0xda   :  { %1892 = vmatpush3.msra.mxu1 %v43_v31 }
  0xdb   :  { %1893 = vmatprep.subr.mxu1 %v2073_v13 }
  0xdc   :  { %1894 = vmatpush3.msra.mxu1 %v42_v32  ;;  %v1006_v32 = vld [vmem:[%s2567_s3 + $0x40] sm:$0xff] }
  0xdd   :  { %1895 = vmatprep.subr.mxu1 %v2073_v13 }
  0xde   :  { %1896 = vmatpush3.msra.mxu1 %v41_v53  ;;  %v1013_v53 = vld [vmem:[%s2567_s3 + $0x78] sm:$0xff] }
  0xdf   :  { %1897 = vmatprep.subr.mxu1 %v2073_v13 }
  0xe0   :  { %1898 = vmatpush3.msra.mxu1 %v40_v54  ;;  %v1012_v54 = vld [vmem:[%s2567_s3 + $0x70] sm:$0xff] }
  0xe1   :  { %1917 = vmatprep.subr.mxu1 %v2073_v13 }
 0x189   :  { %v1837_v21 = vpop.f32.mrf.mxu1 }
 0x18b   :  { %v225_v22 = vpop.f32.mrf.mxu1 }
 0x18c   :  { %1848 = vmatprep.mubr.msk.f32.mxu0 %vm140_vm1, %v225_v22  ;;  %v1002_v22 = vld [vmem:[%s2567_s3 + $0x20] sm:$0xff] }
 0x18d   :  { %v1840_v23 = vpop.f32.mrf.mxu1  ;;  %1849 = vmatmul.mubr.msk.f32.vlgmr.msra.gmra.mxu0 %vm140_vm1, %v1837_v21 }
 0x18f   :  { %v235_v24 = vpop.f32.mrf.mxu1 }
 0x190   :  { %1851 = vmatprep.mubr.msk.f32.mxu0 %vm140_vm1, %v235_v24  ;;  %v1000_v24 = vld [vmem:[%s2567_s3 + $0x10] sm:$0xff] }
 0x191   :  { %v1843_v25 = vpop.f32.mrf.mxu1  ;;  %1852 = vmatmul.mubr.msk.f32.gmra.mxu0 %vm140_vm1, %v1840_v23  ;;  %v1001_v23 = vld [vmem:[%s2567_s3 + $0x18] sm:$0xff] }
 0x193   :  { %v245_v26 = vpop.f32.mrf.mxu1 }
 0x194   :  { %1854 = vmatprep.mubr.msk.f32.mxu0 %vm140_vm1, %v245_v26  ;;  %v998_v26 = vld [vmem:[%s2567_s3] sm:$0xff] }
 0x195   :  { %1855 = vmatmul.mubr.msk.f32.gmra.mxu0 %vm140_vm1, %v1843_v25  ;;  %v460_v27 = vpop.f32.mrf.mxu1  ;;  %v999_v25 = vld [vmem:[%s2567_s3 + $0x8] sm:$0xff] }
 0x196   :  { %1884 = vmatprep.mubr.msk.f32.mxu0 %vm2074_vm2, %v2073_v13  ;;  %v461_v51 = vadd.f32 %v1681_v48, %v460_v27  ;;  %v1690_v27 = vld [vmem:[%s2565_s2 + $0x3] ss:$0 sm:$0xff] }
 0x197   :  { %v1871_v28 = vpop.f32.mrf.mxu1 }
 0x24d   :  { %v1850_v33 = vpop.f32.mrf.mxu0 }
 0x24e   :  { %v2234_v50 = vmul.f32 %v1850_v33, %v18_v46  ;;  %v1005_v33 = vld [vmem:[%s2567_s3 + $0x38] sm:$0xff]  ;;  %v1695_v46 = vld [vmem:[%s2565_s2 + $0x5] ss:$0 sm:$0xff] }
 0x24f   :  { %v338_v34 = vpop.f32.mrf.mxu0 }
 0x250   :  { %v2238_v52 = vmul.f32 %v338_v34, %v17_v49  ;;  %v1004_v34 = vld [vmem:[%s2567_s3 + $0x30] sm:$0xff] }
 0x251   :  { %v1853_v35 = vpop.f32.mrf.mxu0 }
 0x252   :  { %v2217_v45 = vmul.f32 %v1853_v35, %v20_v41  ;;  %v1693_v35 = vld [vmem:[%s2565_s2 + $0x4] ss:$0 sm:$0xff] }
 0x253   :  { %v348_v36 = vpop.f32.mrf.mxu0  ;;  %v1010_v41 = vld [vmem:[%s2567_s3 + $0x60] sm:$0xff] }
 0x254   :  { %v2224_v47 = vmul.f32 %v348_v36, %v19_v44 }
 0x255   :  { %v1856_v38 = vpop.f32.mrf.mxu0 }
 0x256   :  { %v2205_v40 = vmul.f32 %v1856_v38, %v22_v37 }
 0x257   :  { %v358_v42 = vpop.f32.mrf.mxu0 }
 0x258   :  { %v2210_v43 = vmul.f32 %v358_v42, %v21_v39  ;;  %1873 = vmatpush3.msra.mxu0 %v2205_v40  ;;  %v1009_v42 = vld [vmem:[%s2567_s3 + $0x58] sm:$0xff] }
 0x259   :  { %1874 = vmatprep.subr.mxu0 %v2073_v13 }
 0x25a   :  { %1875 = vmatpush3.msra.mxu0 %v2210_v43 }
 0x25b   :  { %1876 = vmatprep.subr.mxu0 %v2073_v13 }
 0x25c   :  { %1877 = vmatpush3.msra.mxu0 %v2217_v45 }
 0x25d   :  { %1878 = vmatprep.subr.mxu0 %v2073_v13 }
 0x25e   :  { %1879 = vmatpush3.msra.mxu0 %v2224_v47 }
 0x25f   :  { %1880 = vmatprep.subr.mxu0 %v2073_v13 }
 0x260   :  { %1881 = vmatpush3.msra.mxu0 %v2234_v50 }
 0x261   :  { %1882 = vmatprep.subr.mxu0 %v2073_v13 }
 0x262   :  { %1883 = vmatpush3.msra.mxu0 %v2238_v52 }
 0x263   :  { %1885 = vmatmul.mubr.msk.f32.vlgmr.msra.gmra.mxu0 %vm390_vm3, %v461_v51  ;;  %1902 = vmatprep.subr.mxu0 %v2073_v13  ;;  %v1015_v51 = vld [vmem:[%s2567_s3 + $0x88] sm:$0xff] }
 0x264   :  { %1903 = vmatpush3.msra.mxu0 %v2205_v40  ;;  %1914 = vmatprep.mubr.msk.f32.mxu0 %vm2074_vm2, %v2073_v13 }
 0x265   :  { %1904 = vmatprep.subr.mxu0 %v2073_v13 }
 0x266   :  { %1905 = vmatpush3.msra.mxu0 %v2210_v43 }
 0x267   :  { %1906 = vmatprep.subr.mxu0 %v2073_v13 }
 0x268   :  { %1907 = vmatpush3.msra.mxu0 %v2217_v45 }
 0x269   :  { %1908 = vmatprep.subr.mxu0 %v2073_v13 }
 0x26a   :  { %1909 = vmatpush3.msra.mxu0 %v2224_v47 }
 0x26b   :  { %1910 = vmatprep.subr.mxu0 %v2073_v13 }
 0x26c   :  { %1911 = vmatpush3.msra.mxu0 %v2234_v50 }
 0x26d   :  { %1912 = vmatprep.subr.mxu0 %v2073_v13 }
 0x26e   :  { %1913 = vmatpush3.msra.mxu0 %v2238_v52 }
 0x26f   :  { %1932 = vmatprep.subr.mxu0 %v2073_v13 }
 0x323   :  { %v533_v55 = vpop.f32.mrf.mxu0 }
 0x324   :  { %v537_v56 = vmax.f32 %v533_v55, 0.0  ;;  %v1019_v55 = vld [vmem:[%s2567_s3 + $0xa8] sm:$0xff] }
 0x325   :  { %v1886_v57 = vpop.f32.mrf.mxu0 }
 0x326   :  { %1900 = vmatmul.mubr.msk.f32.vlgmr.msra.gmra.mxu1 %vm390_vm3, %v537_v56  ;;  %v1697_v57 = vld [vmem:[%s2565_s2 + $0x6] ss:$0 sm:$0xff] }
 0x327   :  { %1929 = vmatprep.mubr.msk.f32.mxu1 %vm2074_vm2, %v2073_v13  ;;  %1918 = vmatpush3.msra.mxu1 %v51_v58 }
 0x328   :  { %1919 = vmatprep.subr.mxu1 %v2073_v13 }
 0x329   :  { %1920 = vmatpush3.msra.mxu1 %v50_v59 }
 0x32a   :  { %1921 = vmatprep.subr.mxu1 %v2073_v13 }
 0x32b   :  { %1922 = vmatpush3.msra.mxu1 %v49_v60 }
 0x32c   :  { %1923 = vmatprep.subr.mxu1 %v2073_v13 }
 0x32d   :  { %1924 = vmatpush3.msra.mxu1 %v48_v61 }
 0x32e   :  { %1925 = vmatprep.subr.mxu1 %v2073_v13 }
 0x32f   :  { %1926 = vmatpush3.msra.mxu1 %v47_v2  ;;  %v1699_v2 = vld [vmem:[%s2565_s2 + $0x7] ss:$0 sm:$0xff] }
 0x330   :  { %1927 = vmatprep.subr.mxu1 %v2073_v13 }
 0x331   :  { %1928 = vmatpush3.msra.mxu1 %v46_v3 }
 0x332   :  { %1947 = vmatprep.subr.mxu1 %v2073_v13 }
 0x3e6   :  { %v611_v63 = vpop.f32.mrf.mxu1 }
 0x3e7   :  { %v612_v0 = vadd.f32 %v1684_v62, %v611_v63  ;;  %v1018_v63 = vld [vmem:[%s2567_s3 + $0xa0] sm:$0xff] }
 0x3e8   :  { %v1901_v1 = vpop.f32.mrf.mxu1 }
 0x3e9   :  { %1915 = vmatmul.mubr.msk.f32.vlgmr.msra.gmra.mxu0 %vm390_vm3, %v612_v0  ;;  %v1017_v0 = vld [vmem:[%s2567_s3 + $0x98] sm:$0xff]  ;;  %v1016_v1 = vld [vmem:[%s2567_s3 + $0x90] sm:$0xff] }
 0x3ea   :  { %1933 = vmatpush3.msra.mxu0 %v2205_v40  ;;  %1944 = vmatprep.mubr.msk.f32.mxu0 %vm2074_vm2, %v2073_v13 }
 0x3eb   :  { %1934 = vmatprep.subr.mxu0 %v2073_v13 }
 0x3ec   :  { %1935 = vmatpush3.msra.mxu0 %v2210_v43 }
 0x3ed   :  { %1936 = vmatprep.subr.mxu0 %v2073_v13 }
 0x3ee   :  { %1937 = vmatpush3.msra.mxu0 %v2217_v45 }
 0x3ef   :  { %1938 = vmatprep.subr.mxu0 %v2073_v13 }
 0x3f0   :  { %1939 = vmatpush3.msra.mxu0 %v2224_v47 }
 0x3f1   :  { %1940 = vmatprep.subr.mxu0 %v2073_v13 }
 0x3f2   :  { %1941 = vmatpush3.msra.mxu0 %v2234_v50 }
 0x3f3   :  { %1942 = vmatprep.subr.mxu0 %v2073_v13 }
 0x3f4   :  { %1943 = vmatpush3.msra.mxu0 %v2238_v52 }
 0x3f5   :  { %1962 = vmatprep.subr.mxu0 %v2073_v13 }
 0x4a9   :  { %v684_v4 = vpop.f32.mrf.mxu0 }
 0x4aa   :  { %v2312_v5 = vmax.f32 %v684_v4, 0.0 }
 0x4ab   :  { %v1916_v6 = vpop.f32.mrf.mxu0 }
 0x4ac   :  { %991 = vst.msk [vmem:[%s2566_s4] sm:$0x3] %vm990_vm4, %v2312_v5  ;;  %1930 = vmatmul.mubr.msk.f32.vlgmr.msra.gmra.mxu1 %vm390_vm3, %v2312_v5 }
 0x4ad   :  { %1959 = vmatprep.mubr.msk.f32.mxu1 %vm2074_vm2, %v2073_v13  ;;  %1948 = vmatpush3.msra.mxu1 %v57_v7  ;;  %v1023_v7 = vld [vmem:[%s2567_s3 + $0xc8] sm:$0xff] }
 0x4ae   :  { %1949 = vmatprep.subr.mxu1 %v2073_v13 }
 0x4af   :  { %1950 = vmatpush3.msra.mxu1 %v56_v8  ;;  %v1022_v8 = vld [vmem:[%s2567_s3 + $0xc0] sm:$0xff] }
 0x4b0   :  { %1951 = vmatprep.subr.mxu1 %v2073_v13 }
 0x4b1   :  { %1952 = vmatpush3.msra.mxu1 %v55_v9  ;;  %v1021_v9 = vld [vmem:[%s2567_s3 + $0xb8] sm:$0xff] }
 0x4b2   :  { %1953 = vmatprep.subr.mxu1 %v2073_v13 }
 0x4b3   :  { %1954 = vmatpush3.msra.mxu1 %v54_v10  ;;  %v1020_v10 = vld [vmem:[%s2567_s3 + $0xb0] sm:$0xff] }
 0x4b4   :  { %1955 = vmatprep.subr.mxu1 %v2073_v13 }
 0x4b5   :  { %1956 = vmatpush3.msra.mxu1 %v53_v11  ;;  %v1027_v11 = vld [vmem:[%s2567_s3 + $0xe8] sm:$0xff] }
 0x4b6   :  { %1957 = vmatprep.subr.mxu1 %v2073_v13 }
 0x4b7   :  { %1958 = vmatpush3.msra.mxu1 %v52_v17 }
 0x4b8   :  { %1977 = vmatprep.subr.mxu1 %v2073_v13 }
 0x56c   :  { %v762_v14 = vpop.f32.mrf.mxu1 }
 0x56d   :  { %v763_v15 = vadd.f32 %v1687_v12, %v762_v14  ;;  %v1701_v12 = vld [vmem:[%s2565_s2 + $0x8] ss:$0 sm:$0xff] }
 0x56e   :  { %v1931_v16 = vpop.f32.mrf.mxu1 }
 0x56f   :  { %1945 = vmatmul.mubr.msk.f32.vlgmr.msra.gmra.mxu0 %vm390_vm3, %v763_v15 }
 0x570   :  { %1963 = vmatpush3.msra.mxu0 %v2205_v40  ;;  %1974 = vmatprep.mubr.msk.f32.mxu0 %vm2074_vm2, %v2073_v13  ;;  %v1011_v40 = vld [vmem:[%s2567_s3 + $0x68] sm:$0xff] }
 0x571   :  { %1964 = vmatprep.subr.mxu0 %v2073_v13 }
 0x572   :  { %1965 = vmatpush3.msra.mxu0 %v2210_v43  ;;  %v1008_v43 = vld [vmem:[%s2567_s3 + $0x50] sm:$0xff] }
 0x573   :  { %1966 = vmatprep.subr.mxu0 %v2073_v13 }
 0x574   :  { %1967 = vmatpush3.msra.mxu0 %v2217_v45 }
 0x575   :  { %1968 = vmatprep.subr.mxu0 %v2073_v13 }
 0x576   :  { %1969 = vmatpush3.msra.mxu0 %v2224_v47 }
 0x577   :  { %1970 = vmatprep.subr.mxu0 %v2073_v13 }
 0x578   :  { %1971 = vmatpush3.msra.mxu0 %v2234_v50 }
 0x579   :  { %1972 = vmatprep.subr.mxu0 %v2073_v13 }
 0x57a   :  { %1973 = vmatpush3.msra.mxu0 %v2238_v52  ;;  %v1014_v52 = vld [vmem:[%s2567_s3 + $0x80] sm:$0xff] }
 0x57b   :  { %1992 = vmatprep.subr.mxu0 %v2073_v13 }
 0x62f   :  { %v835_v18 = vpop.f32.mrf.mxu0 }
 0x630   :  { %v839_v19 = vmax.f32 %v835_v18, 0.0 }
 0x631   :  { %v1946_v21 = vpop.f32.mrf.mxu0 }
 0x632   :  { %1960 = vmatmul.mubr.msk.f32.vlgmr.msra.gmra.mxu1 %vm390_vm3, %v839_v19  ;;  %v1026_v19 = vld [vmem:[%s2567_s3 + $0xe0] sm:$0xff]  ;;  %v1024_v21 = vld [vmem:[%s2567_s3 + $0xd0] sm:$0xff] }
 0x633   :  { %1978 = vmatpush3.msra.mxu1 %v1003_v20  ;;  %1989 = vmatprep.mubr.msk.f32.mxu1 %vm2074_vm2, %v2073_v13  ;;  %v1025_v20 = vld [vmem:[%s2567_s3 + $0xd8] sm:$0xff] }
 0x634   :  { %1979 = vmatprep.subr.mxu1 %v2073_v13 }
 0x635   :  { %1980 = vmatpush3.msra.mxu1 %v1002_v22  ;;  %v1703_v22 = vld [vmem:[%s2565_s2 + $0x9] ss:$0 sm:$0xff] }
 0x636   :  { %1981 = vmatprep.subr.mxu1 %v2073_v13 }
 0x637   :  { %1982 = vmatpush3.msra.mxu1 %v1001_v23 }
 0x638   :  { %1983 = vmatprep.subr.mxu1 %v2073_v13 }
 0x639   :  { %1984 = vmatpush3.msra.mxu1 %v1000_v24 }
 0x63a   :  { %1985 = vmatprep.subr.mxu1 %v2073_v13 }
 0x63b   :  { %1986 = vmatpush3.msra.mxu1 %v999_v25 }
 0x63c   :  { %1987 = vmatprep.subr.mxu1 %v2073_v13 }
 0x63d   :  { %1988 = vmatpush3.msra.mxu1 %v998_v26 }
 0x63e   :  { %1990 = vmatmul.mubr.msk.f32.vlgmr.msra.gmra.mxu1 %vm390_vm3, %v2312_v5  ;;  %2014 = vmatprep.subr.mxu1 %v2073_v13 }
 0x63f   :  { %2022 = vmatprep.mubr.msk.f32.mxu1 %vm2074_vm2, %v2073_v13  ;;  %2015 = vmatpush3.msra.mxu1 %v1015_v51 }
 0x640   :  { %2016 = vmatprep.subr.mxu1 %v2073_v13 }
 0x641   :  { %2017 = vmatpush3.msra.mxu1 %v1014_v52 }
 0x642   :  { %2018 = vmatprep.subr.mxu1 %v2073_v13 }
 0x643   :  { %2019 = vmatpush3.msra.mxu1 %v1013_v53 }
 0x644   :  { %2020 = vmatprep.subr.mxu1 %v2073_v13 }
 0x645   :  { %2021 = vmatpush3.msra.mxu1 %v1012_v54 }
 0x646   :  { %2036 = vmatprep.subr.mxu1 %v2073_v13 }
 0x6f2   :  { %v913_v28 = vpop.f32.mrf.mxu1 }
 0x6f3   :  { %v914_v29 = vadd.f32 %v1690_v27, %v913_v28  ;;  %v1031_v27 = vld [vmem:[%s2567_s3 + $0x108] sm:$0xff]  ;;  %v1030_v28 = vld [vmem:[%s2567_s3 + $0x100] sm:$0xff] }
 0x6f4   :  { %v1961_v31 = vpop.f32.mrf.mxu1 }
 0x6f5   :  { %1975 = vmatmul.mubr.msk.f32.vlgmr.msra.gmra.mxu0 %vm390_vm3, %v914_v29  ;;  %v1029_v29 = vld [vmem:[%s2567_s3 + $0xf8] sm:$0xff]  ;;  %v1705_v31 = vld [vmem:[%s2565_s2 + $0xa] ss:$0 sm:$0xff] }
 0x6f6   :  { %1993 = vmatpush3.msra.mxu0 %v1007_v30  ;;  %2000 = vmatprep.mubr.msk.f32.mxu0 %vm2074_vm2, %v2073_v13  ;;  %v1028_v30 = vld [vmem:[%s2567_s3 + $0xf0] sm:$0xff]  ;;  %s2076_s3 = smov 96  }
 0x6f7   :  { %1994 = vmatprep.subr.mxu0 %v2073_v13 }
 0x6f8   :  { %1995 = vmatpush3.msra.mxu0 %v1006_v32 }
 0x6f9   :  { %1996 = vmatprep.subr.mxu0 %v2073_v13 }
 0x6fa   :  { %1997 = vmatpush3.msra.mxu0 %v1005_v33 }
 0x6fb   :  { %1998 = vmatprep.subr.mxu0 %v2073_v13 }
 0x6fc   :  { %1999 = vmatpush3.msra.mxu0 %v1004_v34 }
 0x6fd   :  { %2003 = vmatprep.subr.mxu0 %v2073_v13 }
 0x6fe   :  { %v1102_v36 = vpop.f32.mrf.mxu1 }
 0x6ff   :  { %v1103_v37 = vadd.f32 %v1693_v35, %v1102_v36 }
 0x700   :  { %v1991_v38 = vpop.f32.mrf.mxu1 }
 0x701   :  { %v2420_v39 = vmax.f32 %v1103_v37, 0.0 }
 0x703   :  { %2001 = vmatmul.mubr.msk.f32.vlgmr.msra.gmra.mxu0 %vm1111_vm5, %v2420_v39 }
 0x704   :  { %2011 = vmatprep.mubr.msk.f32.mxu0 %vm2074_vm2, %v2073_v13  ;;  %2004 = vmatpush3.msra.mxu0 %v1011_v40 }
 0x705   :  { %2005 = vmatprep.subr.mxu0 %v2073_v13 }
 0x706   :  { %2006 = vmatpush3.msra.mxu0 %v1010_v41 }
 0x707   :  { %2007 = vmatprep.subr.mxu0 %v2073_v13 }
 0x708   :  { %2008 = vmatpush3.msra.mxu0 %v1009_v42 }
 0x709   :  { %2009 = vmatprep.subr.mxu0 %v2073_v13 }
 0x70a   :  { %2010 = vmatpush3.msra.mxu0 %v1008_v43 }
 0x70b   :  { %2025 = vmatprep.subr.mxu0 %v2073_v13 }
 0x7b5   :  { %v986_v44 = vpop.f32.mrf.mxu0 }
 0x7b6   :  { %993 = vrot.lane.b32.xlu0 %v986_v44, %s2075_s1 }
 0x7b7   :  { %v1976_v45 = vpop.f32.mrf.mxu0 }
 0x7c3   :  { %v1181_v47 = vpop.f32.mrf.mxu0 }
 0x7c4   :  { %v1182_v48 = vadd.f32 %v1695_v46, %v1181_v47 }
 0x7c5   :  { %v2002_v49 = vpop.f32.mrf.mxu0 }
 0x7c6   :  { %v1185_v50 = vmax.f32 %v1182_v48, 0.0 }
 0x7c8   :  { %2012 = vmatmul.mubr.msk.f32.vlgmr.msra.gmra.mxu0 %vm1111_vm5, %v1185_v50 }
 0x7c9   :  { %2033 = vmatprep.mubr.msk.f32.mxu0 %vm2074_vm2, %v2073_v13  ;;  %2026 = vmatpush3.msra.mxu0 %v1019_v55 }
 0x7ca   :  { %2027 = vmatprep.subr.mxu0 %v2073_v13 }
 0x7cb   :  { %2028 = vmatpush3.msra.mxu0 %v1018_v63 }
 0x7cc   :  { %2029 = vmatprep.subr.mxu0 %v2073_v13 }
 0x7cd   :  { %2030 = vmatpush3.msra.mxu0 %v1017_v0 }
 0x7ce   :  { %2031 = vmatprep.subr.mxu0 %v2073_v13 }
 0x7cf   :  { %2032 = vmatpush3.msra.mxu0 %v1016_v1 }
 0x7d0   :  { %2047 = vmatprep.subr.mxu0 %v2073_v13 }
 0x828   :  { %v994_v56 = vpop.permute.xlu0 %993 }
 0x829   :  { %997 = vst.msk [vmem:[%s2566_s4] sm:$0x3] %vm996_vm6, %v994_v56 }
 0x888   :  { %v1259_v58 = vpop.f32.mrf.mxu0 }
 0x889   :  { %v1260_v59 = vadd.f32 %v1697_v57, %v1259_v58 }
 0x88a   :  { %v2013_v60 = vpop.f32.mrf.mxu0 }
 0x88b   :  { %v1263_v61 = vmax.f32 %v1260_v59, 0.0 }
 0x88d   :  { %v1264_v62 = vadd.f32 %v1263_v61, %v2420_v39 }
 0x88f   :  { %2023 = vmatmul.mubr.msk.f32.vlgmr.msra.gmra.mxu1 %vm1111_vm5, %v1264_v62 }
 0x890   :  { %2044 = vmatprep.mubr.msk.f32.mxu1 %vm2074_vm2, %v2073_v13  ;;  %2037 = vmatpush3.msra.mxu1 %v1023_v7 }
 0x891   :  { %2038 = vmatprep.subr.mxu1 %v2073_v13 }
 0x892   :  { %2039 = vmatpush3.msra.mxu1 %v1022_v8 }
 0x893   :  { %2040 = vmatprep.subr.mxu1 %v2073_v13 }
 0x894   :  { %2041 = vmatpush3.msra.mxu1 %v1021_v9 }
 0x895   :  { %2042 = vmatprep.subr.mxu1 %v2073_v13 }
 0x896   :  { %2043 = vmatpush3.msra.mxu1 %v1020_v10 }
 0x897   :  { %2058 = vmatprep.subr.mxu1 %v2073_v13 }
 0x94f   :  { %v1338_v3 = vpop.f32.mrf.mxu1 }
 0x950   :  { %v1339_v4 = vadd.f32 %v1699_v2, %v1338_v3 }
 0x951   :  { %v2024_v5 = vpop.f32.mrf.mxu1 }
 0x952   :  { %v1342_v6 = vmax.f32 %v1339_v4, 0.0 }
 0x954   :  { %2034 = vmatmul.mubr.msk.f32.vlgmr.msra.gmra.mxu0 %vm1111_vm5, %v1342_v6 }
 0x955   :  { %2055 = vmatprep.mubr.msk.f32.mxu0 %vm2074_vm2, %v2073_v13  ;;  %2048 = vmatpush3.msra.mxu0 %v1027_v11 }
 0x956   :  { %2049 = vmatprep.subr.mxu0 %v2073_v13 }
 0x957   :  { %2050 = vmatpush3.msra.mxu0 %v1026_v19 }
 0x958   :  { %2051 = vmatprep.subr.mxu0 %v2073_v13 }
 0x959   :  { %2052 = vmatpush3.msra.mxu0 %v1025_v20 }
 0x95a   :  { %2053 = vmatprep.subr.mxu0 %v2073_v13 }
 0x95b   :  { %2054 = vmatpush3.msra.mxu0 %v1024_v21 }
 0xa14   :  { %v1416_v14 = vpop.f32.mrf.mxu0 }
 0xa15   :  { %v1417_v15 = vadd.f32 %v1701_v12, %v1416_v14 }
 0xa16   :  { %v2035_v16 = vpop.f32.mrf.mxu0 }
 0xa17   :  { %v1420_v17 = vmax.f32 %v1417_v15, 0.0 }
 0xa19   :  { %v1421_v18 = vadd.f32 %v1420_v17, %v1263_v61 }
 0xa1b   :  { %2045 = vmatmul.mubr.msk.f32.vlgmr.msra.gmra.mxu1 %vm1111_vm5, %v1421_v18 }
 0xa1c   :  { %2066 = vmatprep.mubr.msk.f32.mxu1 %vm2074_vm2, %v2073_v13  ;;  %2059 = vmatpush3.msra.mxu1 %v1031_v27 }
 0xa1d   :  { %2060 = vmatprep.subr.mxu1 %v2073_v13 }
 0xa1e   :  { %2061 = vmatpush3.msra.mxu1 %v1030_v28 }
 0xa1f   :  { %2062 = vmatprep.subr.mxu1 %v2073_v13 }
 0xa20   :  { %2063 = vmatpush3.msra.mxu1 %v1029_v29 }
 0xa21   :  { %2064 = vmatprep.subr.mxu1 %v2073_v13  ;;  %v1707_v13 = vld [vmem:[%s2565_s2 + $0xb] ss:$0 sm:$0xff] }
 0xa22   :  { %2065 = vmatpush3.msra.mxu1 %v1028_v30 }
 0xadb   :  { %v1495_v23 = vpop.f32.mrf.mxu1 }
 0xadc   :  { %v1496_v24 = vadd.f32 %v1703_v22, %v1495_v23 }
 0xadd   :  { %v2046_v25 = vpop.f32.mrf.mxu1 }
 0xade   :  { %v1499_v26 = vmax.f32 %v1496_v24, 0.0 }
 0xae0   :  { %2056 = vmatmul.mubr.msk.f32.vlgmr.msra.gmra.mxu0 %vm1111_vm5, %v1499_v26 }
 0xba0   :  { %v1573_v32 = vpop.f32.mrf.mxu0 }
 0xba1   :  { %v1574_v33 = vadd.f32 %v1705_v31, %v1573_v32 }
 0xba2   :  { %v2057_v34 = vpop.f32.mrf.mxu0 }
 0xba3   :  { %v1577_v35 = vmax.f32 %v1574_v33, 0.0 }
 0xba5   :  { %v1578_v36 = vadd.f32 %v1577_v35, %v1420_v17 }
 0xba7   :  { %v1579_v37 = vadd.f32 %v1578_v36, %v2420_v39 }
 0xba9   :  { %2067 = vmatmul.mubr.msk.f32.vlgmr.msra.gmra.mxu1 %vm1111_vm5, %v1579_v37 }
 0xc69   :  { %v1653_v38 = vpop.f32.mrf.mxu1 }
 0xc6a   :  { %v1654_v40 = vadd.f32 %v1707_v13, %v1653_v38 }
 0xc6b   :  { %v2068_v41 = vpop.f32.mrf.mxu1 }
 0xc6c   :  { %1658 = vrot.lane.b32.xlu0 %v1654_v40, %s2076_s3 }
 0xcde   :  { %v1659_v42 = vpop.permute.xlu0 %1658 }
 0xcdf   :  { %1662 = vst.msk [vmem:[%s2566_s4] sm:$0x3] %vm1661_vm7, %v1659_v42 }

</bundles_post_ra>
